<compile_context>
chip_gen: v6e
topology: v6e:2x2x1
jax: 0.10.0
libtpu: 0.0.40
codegen_flags: <defaults>
</compile_context>

<pallas_src>
import jax
import jax.numpy as jnp
from jax.experimental import pallas as pl
from jax.experimental.pallas import tpu as pltpu


def _round_up(x: int, m: int) -> int:
    return (x + m - 1) // m * m


def _cdiv(a: int, b: int) -> int:
    return (a + b - 1) // b


# ----------------------------------------------------------------------------- kernel
def decoder_kernel(x_ref, w1_ref, b1_ref, w2_ref, b2_ref, o_ref):
    # Activations arrive in their original dtype (f32); cast to bf16 in-register for
    # the MXU (cheaper than a separate wrapper-side cast/pad pass over HBM).
    x = x_ref[...].astype(w1_ref.dtype)
    # Linear 1: [TB, Din] @ [Din, H_p] -> f32 accumulator on the MXU.
    h = jnp.dot(x, w1_ref[...], preferred_element_type=jnp.float32)
    h = h + b1_ref[...]                      # [1, H_p] f32, broadcasts over batch rows
    # Swish in f32 on the accumulator (sigmoid -> EUP slot, mul -> VPU; v5e has no
    # bf16 VPU/EUP path, so f32 is the portable choice).
    h = h * jax.nn.sigmoid(h)
    # Dropout: nn.Dropout in eval mode == identity.
    # TODO(synk): training-mode dropout (pltpu.prng_seed + prng_random_bits mask) not emitted.
    # Linear 2: cast activations to bf16 for the MXU, accumulate in f32.
    out = jnp.dot(h.astype(w2_ref.dtype), w2_ref[...],
                  preferred_element_type=jnp.float32)
    out = out + b2_ref[...]                  # [1, Dout_p] f32
    o_ref[...] = out.astype(o_ref.dtype)     # lane-dense (Dout_p % 128 == 0) store


# ---------------------------------------------------------------- one-time param prep
def prepare_decoder_params(w1, b1, w2, b2, mxu_dtype=jnp.bfloat16):
    """One-time parameter preparation (do this at init, NOT per forward call).

    Pads the hidden / output feature dims up to multiples of 128 so both matmuls
    present full MXU tiles and the output store is an unmasked lane-dense vst.
    Zero padding is exact for this network: padded hidden units get pre-activation 0,
    swish(0) = 0, and they multiply zero rows of w2.  Din is NOT padded (the x / w1
    blocks use the full array extent, which BlockSpec permits).
    """
    Din, H = w1.shape
    Dout = w2.shape[-1]
    H_p = _round_up(H, 128)
    Dout_p = _round_up(Dout, 128)

    b1 = jnp.asarray(b1).reshape(1, -1)
    b2 = jnp.asarray(b2).reshape(1, -1)

    w1p = jnp.zeros((Din, H_p), mxu_dtype).at[:, :H].set(w1.astype(mxu_dtype))
    b1p = jnp.zeros((1, H_p), jnp.float32).at[:, :H].set(b1.astype(jnp.float32))
    w2p = jnp.zeros((H_p, Dout_p), mxu_dtype).at[:H, :Dout].set(w2.astype(mxu_dtype))
    b2p = jnp.zeros((1, Dout_p), jnp.float32).at[:, :Dout].set(b2.astype(jnp.float32))
    return dict(w1=w1p, b1=b1p, w2=w2p, b2=b2p, out_dim=Dout)


def _vmem_limit_bytes() -> int:
    # Per-generation VMEM limit: 128 MiB parts (v5e/v6e) get ~96 MiB, v7x (64 MiB) ~48 MiB.
    cap = 64 * 1024 * 1024
    try:
        cap = int(getattr(pltpu.get_tpu_info(), "vmem_capacity_bytes", cap))
    except Exception:
        pass
    return min(cap * 3 // 4, 100 * 1024 * 1024)


# --------------------------------------------------------------------------- forward
def decoder_forward(x, params, *, block_batch=512, out_dtype=None):
    """x: [B, Din] (unpadded); params from prepare_decoder_params().

    Set out_dtype=jnp.bfloat16 to halve output writeback if downstream accepts it.
    """
    w1p, b1p, w2p, b2p = params["w1"], params["b1"], params["w2"], params["b2"]
    Dout = params["out_dim"]
    B, Din = x.shape
    assert w1p.shape[0] == Din, "params were prepared for a different input_dim"
    H_p, Dout_p = w1p.shape[1], w2p.shape[1]
    out_dtype = x.dtype if out_dtype is None else out_dtype

    # ---- batch tiling --------------------------------------------------------
    block_batch = max(8, _round_up(block_batch, 8))
    if B <= 256:
        # Tiny batch: one grid step, block == full dim -> no batch padding and no
        # pipelining machinery (for these sizes the kernel is pure per-step overhead).
        TB, grid_b = B, 1
    else:
        # >= 2 grid steps so dimension_semantics=("parallel",) has work to split
        # across v7x's two TensorCores; TB a multiple of 8 (f32 output sublanes).
        TB = min(block_batch, _round_up(_cdiv(B, 2), 8))
        grid_b = _cdiv(B, TB)
    B_pad = TB * grid_b
    x_in = x if B_pad == B else jnp.pad(x, ((0, B_pad - B), (0, 0)))

    # TODO(synk): add a K/N-tiled accumulator path (reduction axis last, "arbitrary",
    # pl.when init/finalize) once (Din*H_p + H_p*Dout_p)*2 bytes exceeds the
    # per-generation VMEM budget (e.g. multi-thousand-class heads on v7x's 64 MiB).

    vmem_limit = _vmem_limit_bytes()
    isz = lambda a: jnp.dtype(a.dtype).itemsize
    cost = pl.CostEstimate(
        flops=2 * B_pad * (Din * H_p + H_p * Dout_p),
        transcendentals=B_pad * H_p,
        bytes_accessed=(x_in.size * isz(x_in)
                        + w1p.size * isz(w1p) + w2p.size * isz(w2p)
                        + b1p.size * isz(b1p) + b2p.size * isz(b2p)
                        + B_pad * Dout_p * jnp.dtype(out_dtype).itemsize),
    )

    def _call(weight_mode):
        def wspec(shape):
            if weight_mode is None:
                return pl.BlockSpec(shape, lambda i: (0, 0))
            return pl.BlockSpec(shape, lambda i: (0, 0), pipeline_mode=weight_mode)

        return pl.pallas_call(
            decoder_kernel,
            out_shape=jax.ShapeDtypeStruct((B_pad, Dout_p), out_dtype),
            grid_spec=pltpu.PrefetchScalarGridSpec(
                num_scalar_prefetch=0,
                grid=(grid_b,),
                in_specs=[
                    pl.BlockSpec((TB, Din), lambda i: (i, 0)),   # activations: batch-tiled
                    wspec((Din, H_p)),                           # weights/biases: resident
                    wspec((1, H_p)),
                    wspec((H_p, Dout_p)),
                    wspec((1, Dout_p)),
                ],
                out_specs=pl.BlockSpec((TB, Dout_p), lambda i: (i, 0)),
            ),
            compiler_params=pltpu.CompilerParams(
                dimension_semantics=("parallel",),   # batch is data-parallel (v7x 2 TCs)
                vmem_limit_bytes=vmem_limit,
            ),
            cost_estimate=cost,
        )(x_in, w1p, b1p, w2p, b2p)

    try:
        # Single-buffer the constant-index operands: no re-DMA across steps and half
        # the VMEM footprint of default double-buffering (critical on v7x's 64 MiB).
        out_p = _call(pl.Buffered(1))
    except Exception:
        out_p = _call(None)   # jax version without pipeline_mode / Buffered(1) support

    return out_p[:B, :Dout]


if __name__ == "__main__":
    # Small shapes consistent with Decoder.forward: user_feature is [batch, input_dim].
    batch, input_dim, hidden_dim, output_dim = 2, 32, 64, 16

    key = jax.random.PRNGKey(0)
    kx, k1, k2, k3, k4 = jax.random.split(key, 5)

    x = jax.random.normal(kx, (batch, input_dim), dtype=jnp.float32)

    # nn.Linear-style uniform(-1/sqrt(fan_in), 1/sqrt(fan_in)) init; weights stored as
    # [in, out] so the forward is x @ w + b (equivalent to PyTorch's x @ W^T + b).
    lim1 = 1.0 / (input_dim ** 0.5)
    w1 = jax.random.uniform(k1, (input_dim, hidden_dim), jnp.float32, -lim1, lim1)
    b1 = jax.random.uniform(k2, (hidden_dim,), jnp.float32, -lim1, lim1)
    lim2 = 1.0 / (hidden_dim ** 0.5)
    w2 = jax.random.uniform(k3, (hidden_dim, output_dim), jnp.float32, -lim2, lim2)
    b2 = jax.random.uniform(k4, (output_dim,), jnp.float32, -lim2, lim2)

    params = prepare_decoder_params(w1, b1, w2, b2)   # one-time (init-time) prep
    out = decoder_forward(x, params)
    jax.block_until_ready(out)

    # Plain-JAX reference mirroring the kernel's bf16-input / f32-accumulate arithmetic.
    xb = x.astype(jnp.bfloat16).astype(jnp.float32)
    w1b = w1.astype(jnp.bfloat16).astype(jnp.float32)
    w2b = w2.astype(jnp.bfloat16).astype(jnp.float32)
    h_ref = xb @ w1b + b1[None, :]
    h_ref = h_ref * jax.nn.sigmoid(h_ref)
    h_ref = h_ref.astype(jnp.bfloat16).astype(jnp.float32)
    ref = h_ref @ w2b + b2[None, :]

    assert out.shape == (batch, output_dim)
    assert jnp.allclose(out, ref, atol=1e-2, rtol=1e-2), (
        f"max abs err {jnp.max(jnp.abs(out - ref))}")

    print("KERNEL_OK")
</pallas_src>

<mosaic_0001>
module attributes {stable_mosaic.version = 11 : i64} {
  func.func @decoder_kernel(%arg0: i32, %arg1: memref<2x32xf32, #tpu.memory_space<vmem>>, %arg2: memref<32x128xbf16, #tpu.memory_space<vmem>>, %arg3: memref<1x128xf32, #tpu.memory_space<vmem>>, %arg4: memref<128x128xbf16, #tpu.memory_space<vmem>>, %arg5: memref<1x128xf32, #tpu.memory_space<vmem>>, %arg6: memref<2x128xf32, #tpu.memory_space<vmem>>) attributes {dimension_semantics = [#tpu.dimension_semantics<parallel>], iteration_bounds = array<i64: 1>, scalar_prefetch = 0 : i64, scratch_operands = 0 : i64, tpu.core_type = #tpu.core_type<tc>, window_params = [{transform_indices = @transform_0, window_bounds = array<i64: 2, 32>}, {pipeline_mode = #tpu.pipeline_mode<synchronous>, transform_indices = @transform_1, window_bounds = array<i64: 32, 128>}, {pipeline_mode = #tpu.pipeline_mode<synchronous>, transform_indices = @transform_2, window_bounds = array<i64: 1, 128>}, {pipeline_mode = #tpu.pipeline_mode<synchronous>, transform_indices = @transform_3, window_bounds = array<i64: 128, 128>}, {pipeline_mode = #tpu.pipeline_mode<synchronous>, transform_indices = @transform_4, window_bounds = array<i64: 1, 128>}, {transform_indices = @transform_5, window_bounds = array<i64: 2, 128>}]} {
    %c0 = arith.constant 0 : index
    %c0_0 = arith.constant 0 : index
    %0 = vector.load %arg1[%c0, %c0_0] : memref<2x32xf32, #tpu.memory_space<vmem>>, vector<2x32xf32>
    %1 = arith.truncf %0 : vector<2x32xf32> to vector<2x32xbf16>
    %c0_1 = arith.constant 0 : index
    %c0_2 = arith.constant 0 : index
    %2 = vector.load %arg2[%c0_1, %c0_2] : memref<32x128xbf16, #tpu.memory_space<vmem>>, vector<32x128xbf16>
    %cst = arith.constant dense<0.000000e+00> : vector<2x128xf32>
    %3 = tpu.matmul %1, %2, %cst {dimension_numbers = #tpu.dot_dimension_numbers<[1], [0], [0], [1], [0, 0, 1, 1], [], []>} : vector<2x32xbf16>, vector<32x128xbf16>, vector<2x128xf32> -> vector<2x128xf32>
    %c0_3 = arith.constant 0 : index
    %c0_4 = arith.constant 0 : index
    %4 = vector.load %arg3[%c0_3, %c0_4] : memref<1x128xf32, #tpu.memory_space<vmem>>, vector<1x128xf32>
    %5 = vector.broadcast %4 : vector<1x128xf32> to vector<2x128xf32>
    %6 = arith.addf %3, %5 : vector<2x128xf32>
    %7 = arith.negf %6 : vector<2x128xf32>
    %8 = math.exp %7 : vector<2x128xf32>
    %cst_5 = arith.constant 1.000000e+00 : f32
    %9 = vector.broadcast %cst_5 : f32 to vector<2x128xf32>
    %10 = arith.addf %9, %8 : vector<2x128xf32>
    %11 = arith.divf %9, %10 : vector<2x128xf32>
    %12 = arith.mulf %6, %11 : vector<2x128xf32>
    %13 = arith.truncf %12 : vector<2x128xf32> to vector<2x128xbf16>
    %c0_6 = arith.constant 0 : index
    %c0_7 = arith.constant 0 : index
    %14 = vector.load %arg4[%c0_6, %c0_7] : memref<128x128xbf16, #tpu.memory_space<vmem>>, vector<128x128xbf16>
    %cst_8 = arith.constant dense<0.000000e+00> : vector<2x128xf32>
    %15 = tpu.matmul %13, %14, %cst_8 {dimension_numbers = #tpu.dot_dimension_numbers<[1], [0], [0], [1], [0, 0, 1, 1], [], []>} : vector<2x128xbf16>, vector<128x128xbf16>, vector<2x128xf32> -> vector<2x128xf32>
    %c0_9 = arith.constant 0 : index
    %c0_10 = arith.constant 0 : index
    %16 = vector.load %arg5[%c0_9, %c0_10] : memref<1x128xf32, #tpu.memory_space<vmem>>, vector<1x128xf32>
    %17 = vector.broadcast %16 : vector<1x128xf32> to vector<2x128xf32>
    %18 = arith.addf %15, %17 : vector<2x128xf32>
    %c0_11 = arith.constant 0 : index
    %c0_12 = arith.constant 0 : index
    %19 = vector.load %arg6[%c0_11, %c0_12] : memref<2x128xf32, #tpu.memory_space<vmem>>, vector<2x128xf32>
    tpu.vector_store %arg6[%c0_11, %c0_12], %18 {strides = array<i32>} : memref<2x128xf32, #tpu.memory_space<vmem>>, vector<2x128xf32>,
    return
  }
  func.func @transform_0(%arg0: i32) -> (i32, i32) {
    %c0_i32 = arith.constant 0 : i32
    %c0_i32_0 = arith.constant 0 : i32
    return %arg0, %c0_i32 : i32, i32
  }
  func.func @transform_1(%arg0: i32) -> (i32, i32) {
    %c0_i32 = arith.constant 0 : i32
    %c0_i32_0 = arith.constant 0 : i32
    %c0_i32_1 = arith.constant 0 : i32
    return %c0_i32, %c0_i32_0 : i32, i32
  }
  func.func @transform_2(%arg0: i32) -> (i32, i32) {
    %c0_i32 = arith.constant 0 : i32
    %c0_i32_0 = arith.constant 0 : i32
    %c0_i32_1 = arith.constant 0 : i32
    return %c0_i32, %c0_i32_0 : i32, i32
  }
  func.func @transform_3(%arg0: i32) -> (i32, i32) {
    %c0_i32 = arith.constant 0 : i32
    %c0_i32_0 = arith.constant 0 : i32
    %c0_i32_1 = arith.constant 0 : i32
    return %c0_i32, %c0_i32_0 : i32, i32
  }
  func.func @transform_4(%arg0: i32) -> (i32, i32) {
    %c0_i32 = arith.constant 0 : i32
    %c0_i32_0 = arith.constant 0 : i32
    %c0_i32_1 = arith.constant 0 : i32
    return %c0_i32, %c0_i32_0 : i32, i32
  }
  func.func @transform_5(%arg0: i32) -> (i32, i32) {
    %c0_i32 = arith.constant 0 : i32
    %c0_i32_0 = arith.constant 0 : i32
    return %arg0, %c0_i32 : i32, i32
  }
}

module attributes {stable_mosaic.version = 11 : i64} {
  func.func @decoder_kernel(%arg0: i32, %arg1: memref<2x32xf32, #tpu.memory_space<vmem>>, %arg2: memref<32x128xbf16, #tpu.memory_space<vmem>>, %arg3: memref<1x128xf32, #tpu.memory_space<vmem>>, %arg4: memref<128x128xbf16, #tpu.memory_space<vmem>>, %arg5: memref<1x128xf32, #tpu.memory_space<vmem>>, %arg6: memref<2x128xf32, #tpu.memory_space<vmem>>) attributes {dimension_semantics = [#tpu.dimension_semantics<parallel>], iteration_bounds = array<i64: 1>, scalar_prefetch = 0 : i64, scratch_operands = 0 : i64, tpu.core_type = #tpu.core_type<tc>, window_params = [{transform_indices = @transform_0, window_bounds = array<i64: 2, 32>}, {pipeline_mode = #tpu.pipeline_mode<synchronous>, transform_indices = @transform_1, window_bounds = array<i64: 32, 128>}, {pipeline_mode = #tpu.pipeline_mode<synchronous>, transform_indices = @transform_2, window_bounds = array<i64: 1, 128>}, {pipeline_mode = #tpu.pipeline_mode<synchronous>, transform_indices = @transform_3, window_bounds = array<i64: 128, 128>}, {pipeline_mode = #tpu.pipeline_mode<synchronous>, transform_indices = @transform_4, window_bounds = array<i64: 1, 128>}, {transform_indices = @transform_5, window_bounds = array<i64: 2, 128>}]} {
    %c0 = arith.constant 0 : index
    %c0_0 = arith.constant 0 : index
    %0 = vector.load %arg1[%c0, %c0_0] : memref<2x32xf32, #tpu.memory_space<vmem>>, vector<2x32xf32>
    %1 = arith.truncf %0 : vector<2x32xf32> to vector<2x32xbf16>
    %c0_1 = arith.constant 0 : index
    %c0_2 = arith.constant 0 : index
    %2 = vector.load %arg2[%c0_1, %c0_2] : memref<32x128xbf16, #tpu.memory_space<vmem>>, vector<32x128xbf16>
    %cst = arith.constant dense<0.000000e+00> : vector<2x128xf32>
    %3 = tpu.matmul %1, %2, %cst {dimension_numbers = #tpu.dot_dimension_numbers<[1], [0], [0], [1], [0, 0, 1, 1], [], []>} : vector<2x32xbf16>, vector<32x128xbf16>, vector<2x128xf32> -> vector<2x128xf32>
    %c0_3 = arith.constant 0 : index
    %c0_4 = arith.constant 0 : index
    %4 = vector.load %arg3[%c0_3, %c0_4] : memref<1x128xf32, #tpu.memory_space<vmem>>, vector<1x128xf32>
    %5 = vector.broadcast %4 : vector<1x128xf32> to vector<2x128xf32>
    %6 = arith.addf %3, %5 : vector<2x128xf32>
    %7 = arith.negf %6 : vector<2x128xf32>
    %8 = math.exp %7 : vector<2x128xf32>
    %cst_5 = arith.constant 1.000000e+00 : f32
    %9 = vector.broadcast %cst_5 : f32 to vector<2x128xf32>
    %10 = arith.addf %9, %8 : vector<2x128xf32>
    %11 = arith.divf %9, %10 : vector<2x128xf32>
    %12 = arith.mulf %6, %11 : vector<2x128xf32>
    %13 = arith.truncf %12 : vector<2x128xf32> to vector<2x128xbf16>
    %c0_6 = arith.constant 0 : index
    %c0_7 = arith.constant 0 : index
    %14 = vector.load %arg4[%c0_6, %c0_7] : memref<128x128xbf16, #tpu.memory_space<vmem>>, vector<128x128xbf16>
    %cst_8 = arith.constant dense<0.000000e+00> : vector<2x128xf32>
    %15 = tpu.matmul %13, %14, %cst_8 {dimension_numbers = #tpu.dot_dimension_numbers<[1], [0], [0], [1], [0, 0, 1, 1], [], []>} : vector<2x128xbf16>, vector<128x128xbf16>, vector<2x128xf32> -> vector<2x128xf32>
    %c0_9 = arith.constant 0 : index
    %c0_10 = arith.constant 0 : index
    %16 = vector.load %arg5[%c0_9, %c0_10] : memref<1x128xf32, #tpu.memory_space<vmem>>, vector<1x128xf32>
    %17 = vector.broadcast %16 : vector<1x128xf32> to vector<2x128xf32>
    %18 = arith.addf %15, %17 : vector<2x128xf32>
    %c0_11 = arith.constant 0 : index
    %c0_12 = arith.constant 0 : index
    %19 = vector.load %arg6[%c0_11, %c0_12] : memref<2x128xf32, #tpu.memory_space<vmem>>, vector<2x128xf32>
    tpu.vector_store %arg6[%c0_11, %c0_12], %18 {strides = array<i32>} : memref<2x128xf32, #tpu.memory_space<vmem>>, vector<2x128xf32>,
    return
  }
  func.func @transform_0(%arg0: i32) -> (i32, i32) {
    %c0_i32 = arith.constant 0 : i32
    %c0_i32_0 = arith.constant 0 : i32
    return %arg0, %c0_i32 : i32, i32
  }
  func.func @transform_1(%arg0: i32) -> (i32, i32) {
    %c0_i32 = arith.constant 0 : i32
    %c0_i32_0 = arith.constant 0 : i32
    %c0_i32_1 = arith.constant 0 : i32
    return %c0_i32, %c0_i32_0 : i32, i32
  }
  func.func @transform_2(%arg0: i32) -> (i32, i32) {
    %c0_i32 = arith.constant 0 : i32
    %c0_i32_0 = arith.constant 0 : i32
    %c0_i32_1 = arith.constant 0 : i32
    return %c0_i32, %c0_i32_0 : i32, i32
  }
  func.func @transform_3(%arg0: i32) -> (i32, i32) {
    %c0_i32 = arith.constant 0 : i32
    %c0_i32_0 = arith.constant 0 : i32
    %c0_i32_1 = arith.constant 0 : i32
    return %c0_i32, %c0_i32_0 : i32, i32
  }
  func.func @transform_4(%arg0: i32) -> (i32, i32) {
    %c0_i32 = arith.constant 0 : i32
    %c0_i32_0 = arith.constant 0 : i32
    %c0_i32_1 = arith.constant 0 : i32
    return %c0_i32, %c0_i32_0 : i32, i32
  }
  func.func @transform_5(%arg0: i32) -> (i32, i32) {
    %c0_i32 = arith.constant 0 : i32
    %c0_i32_0 = arith.constant 0 : i32
    return %arg0, %c0_i32 : i32, i32
  }
}

</mosaic_0001>

<bundles_post_ra>
// kernel: tpu_custom_call.1
= control target key start
LH: loop header
LB: loop body
LE: loop exit
PB: predicated region body
PF: predicated region fallthrough
CT: control target
= control target key end

     0   :  { %10 = vsyncpa [#allocation3], 0  ;;  %s484_s0 = inlined_call_operand.hbm [shape: f32[2,32], index: 0, kind: input, shape index: {}]   ;;  %s485_s1 = inlined_call_operand.hbm [shape: bf16[32,128], index: 1, kind: input, shape index: {}]   ;;  %s486_s2 = inlined_call_operand.vmem [shape: f32[1,128], index: 2, kind: input, shape index: {}]   ;;  %s487_s3 = inlined_call_operand.hbm [shape: bf16[128,128], index: 3, kind: input, shape index: {}]   ;;  %s488_s4 = inlined_call_operand.vmem [shape: f32[1,128], index: 4, kind: input, shape index: {}]   ;;  %s489_s5 = inlined_call_operand.hbm [shape: f32[2,128], index: 5, kind: output, shape index: {}]  }
   0x1   :  { %11 = vsyncpa [#allocation6], 0 }
   0x2   :  { %12 = vsyncpa [#allocation4], 0  ;;  %s428_s18 = smov [#allocation5]  }
   0x3   :  { %s28_s19 = sshll.u32 %s428_s18, 4  ;;  %s29_s19 = int_to_ptr.vmem [resolvable:$true] %s28_s19 }
   0x4   :  { %s350_s20 = scalar_lea.vmem %s29_s19, 256  ;;  %p355_p1 = scmp.lt.s32.totalorder %s29_s19, %s29_s19 }
   0x5   :  { %p351_p0 = scmp.ne.s32.totalorder %s29_s19, %s350_s20  ;;  %p356_p2 = scmp.lt.s32.totalorder %s350_s20, %s350_s20 }
   0x7   :  { %p357_p3 = por %p356_p2, %p355_p1 }
   0x9   :  { %p358_p4 = pnand %p357_p3, %p351_p0 }
   0xb   :  { %361 = shalt.err (!%p358_p4)
}
   0xc   :  { %s429_s21 = smov 64   ;;  %s430_s22 = smov 4  }
   0xd   :  { %34 = dma.hbm_to_vmem [thread:$0]  %s485_s1, 256, %s29_s19, [#allocation6], %s429_s21, %s429_s21, %s430_s22  }
   0xe   :  { %s431_s25 = smov [#allocation2]   ;;  %s432_s27 = smov [#allocation7]  }
   0xf   :  { %s19_s26 = sshll.u32 %s431_s25, 4  ;;  %s42_s28 = sshll.u32 %s432_s27, 4  ;;  %s20_s26 = int_to_ptr.vmem [resolvable:$true] %s19_s26  ;;  %s43_s28 = int_to_ptr.vmem [resolvable:$true] %s42_s28 }
  0x10   :  { %s370_s29 = scalar_lea.vmem %s20_s26, 32  ;;  %p375_p6 = scmp.lt.s32.totalorder %s20_s26, %s20_s26 }
  0x11   :  { %p371_p5 = scmp.ne.s32.totalorder %s20_s26, %s370_s29  ;;  %p376_p7 = scmp.lt.s32.totalorder %s370_s29, %s370_s29 }
  0x13   :  { %p377_p8 = por %p376_p7, %p375_p6 }
  0x15   :  { %p378_p9 = pnand %p377_p8, %p371_p5 }
  0x17   :  { %381 = shalt.err (!%p378_p9)
}
  0x18   :  { %22 = dma.hbm_to_vmem [thread:$0]  %s484_s0, 32, %s20_s26, [#allocation3]  }
  0x19   :  { %s390_s7 = scalar_lea.vmem %s43_s28, 1024  ;;  %p395_p11 = scmp.lt.s32.totalorder %s43_s28, %s43_s28 }
  0x1a   :  { %p391_p10 = scmp.ne.s32.totalorder %s43_s28, %s390_s7  ;;  %p396_p12 = scmp.lt.s32.totalorder %s390_s7, %s390_s7 }
  0x1c   :  { %p397_p13 = por %p396_p12, %p395_p11 }
  0x1e   :  { %p398_p0 = pnand %p397_p13, %p391_p10 }
  0x20   :  { %401 = shalt.err (!%p398_p0)
}
  0x21   :  { %48 = dma.hbm_to_vmem [thread:$0]  %s487_s3, 1024, %s43_s28, [#allocation6], %s429_s21, %s429_s21, %s430_s22  }
  0x22   :  { %422 = dma.done.wait [#allocation3], 32  }
  0x23   :  { %423 = vsyncadd [#allocation3], 4294967264 }
  0x24   :  { %424 = dma.done.wait [#allocation6], 1280  }
  0x25   :  { %425 = vsyncadd [#allocation6], 4294966016  ;;  %v433_v0 = vmov 0.0   ;;  %vm434_vm0 = vmmov 0   ;;  %v328_v1 = vld [vmem:[#allocation5 + $0x8] sm:$0xff]   ;;  %v329_v2 = vld [vmem:[#allocation5] sm:$0xff]  }
  0x26   :  { %292 = vmatprep.subr.bf16.mxu0 %v433_v0  ;;  %296 = vmatprep.mubr.msk.bf16.mxu0 %vm434_vm0, %v433_v0  ;;  %v61_v3 = vld [vmem:[#allocation2] sm:$0x3]  ;;  %vm86_vm1 = vcmask 261120   ;;  %v330_v5 = vld [vmem:[#allocation7 + $0x38] sm:$0xff]   ;;  %v331_v6 = vld [vmem:[#allocation7 + $0x30] sm:$0xff]   ;;  %s435_s11 = smov [#allocation8]  }
  0x27   :  { %300 = vmatprep.subr.bf16.mxu1 %v433_v0  ;;  %316 = vmatprep.mubr.msk.bf16.mxu1 %vm434_vm0, %v433_v0  ;;  %v62_v4 = vpack.c.bf16 %v61_v3, %v61_v3  ;;  %v332_v7 = vld [vmem:[#allocation7 + $0x28] sm:$0xff]   ;;  %v333_v8 = vld [vmem:[#allocation7 + $0x20] sm:$0xff]   ;;  %v334_v9 = vld [vmem:[#allocation7 + $0x18] sm:$0xff]  }
  0x28   :  { %293 = vmatpush3.bf16.msra.mxu0 %v328_v1  ;;  %301 = vmatpush3.bf16.msra.mxu1 %v330_v5  ;;  %v335_v10 = vld [vmem:[#allocation7 + $0x10] sm:$0xff]   ;;  %v336_v11 = vld [vmem:[#allocation7 + $0x8] sm:$0xff]   ;;  %v337_v12 = vld [vmem:[#allocation7] sm:$0xff]  }
  0x29   :  { %294 = vmatprep.subr.bf16.mxu0 %v433_v0  ;;  %302 = vmatprep.subr.bf16.mxu1 %v433_v0  ;;  %v266_v13 = vld [vmem:[%s486_s2] ss:$0 sm:$0xff]  ;;  %s256_s2 = sshll.u32 %s435_s11, 4  ;;  %s257_s2 = int_to_ptr.vmem [resolvable:$true] %s256_s2 }
  0x2a   :  { %v271_v25 = vld [vmem:[%s488_s4] ss:$0 sm:$0xff]  ;;  %s402_s12 = scalar_lea.vmem %s257_s2, 32  ;;  %p407_p2 = scmp.lt.s32.totalorder %s257_s2, %s257_s2 }
  0x2b   :  { %p403_p1 = scmp.ne.s32.totalorder %s257_s2, %s402_s12  ;;  %p408_p3 = scmp.lt.s32.totalorder %s402_s12, %s402_s12 }
  0x2c   :  { %295 = vmatpush3.bf16.msra.mxu0 %v329_v2  ;;  %303 = vmatpush3.bf16.msra.mxu1 %v331_v6 }
  0x2d   :  { %304 = vmatprep.subr.bf16.mxu1 %v433_v0  ;;  %p409_p4 = por %p408_p3, %p407_p2 }
  0x2f   :  { %297 = vmatmul.mubr.msk.bf16.vlgmr.msra.gmra.mxu0 %vm86_vm1, %v62_v4  ;;  %p410_p5 = pnand %p409_p4, %p403_p1 }
  0x30   :  { %305 = vmatpush3.bf16.msra.mxu1 %v332_v7 }
  0x31   :  { %306 = vmatprep.subr.bf16.mxu1 %v433_v0 }
  0x34   :  { %307 = vmatpush3.bf16.msra.mxu1 %v333_v8 }
  0x35   :  { %308 = vmatprep.subr.bf16.mxu1 %v433_v0 }
  0x38   :  { %309 = vmatpush3.bf16.msra.mxu1 %v334_v9 }
  0x39   :  { %310 = vmatprep.subr.bf16.mxu1 %v433_v0 }
  0x3c   :  { %311 = vmatpush3.bf16.msra.mxu1 %v335_v10 }
  0x3d   :  { %312 = vmatprep.subr.bf16.mxu1 %v433_v0 }
  0x40   :  { %313 = vmatpush3.bf16.msra.mxu1 %v336_v11 }
  0x41   :  { %314 = vmatprep.subr.bf16.mxu1 %v433_v0 }
  0x44   :  { %315 = vmatpush3.bf16.msra.mxu1 %v337_v12 }
  0xef   :  { %v124_v14 = vpop.f32.mrf.mxu0 }
  0xf0   :  { %v125_v15 = vadd.f32 %v266_v13, %v124_v14 }
  0xf1   :  { %v298_v16 = vpop.f32.mrf.mxu0 }
  0xf2   :  { %v270_v17 = vmul.f32 -1.442695, %v125_v15 }
  0xf3   :  { %v127_v18 = vpop.f32.mrf.mxu0 }
  0xf4   :  { %338 = vpow2.f32 %v270_v17 }
  0xf5   :  { %v299_v19 = vpop.f32.mrf.mxu0 }
 0x101   :  { %v339_v20 = vpop.eup %338 }
 0x102   :  { %v133_v21 = vadd.f32 1.0, %v339_v20 }
 0x104   :  { %340 = vrcp.f32 %v133_v21 }
 0x111   :  { %v341_v22 = vpop.eup %340 }
 0x112   :  { %v136_v23 = vmul.f32 %v341_v22, %v125_v15 }
 0x114   :  { %v137_v24 = vpack.c.bf16 %v136_v23, %v136_v23 }
 0x116   :  { %317 = vmatmul.mubr.bf16.vlgmr.msra.gmra.mxu1 %v137_v24 }
 0x1d6   :  { %v243_v26 = vpop.f32.mrf.mxu1 }
 0x1d7   :  { %v244_v27 = vadd.f32 %v271_v25, %v243_v26 }
 0x1d8   :  { %v318_v28 = vpop.f32.mrf.mxu1 }
 0x1d9   :  { %249 = vst [vmem:[#allocation8] sm:$0x3] %v244_v27 }
 0x1da   :  { %v246_v29 = vpop.f32.mrf.mxu1 }
 0x1db   :  { %413 = shalt.err (!%p410_p5)
}
 0x1dc   :  { %259 = dma.vmem_to_hbm [thread:$0]  %s257_s2, 32, %s489_s5, [#allocation4]   ;;  %v319_v30 = vpop.f32.mrf.mxu1 }
 0x1dd   :  { %426 = dma.done.wait [#allocation4], 32  }
 0x1de   :  { %427 = vsyncadd [#allocation4], 4294967264 }
 0x1df   :  { %263 = vsyncpa [#allocation3], 1 }
 0x1e0   :  { %264 = vsyncpa [#allocation6], 1 }
 0x1e1   :  { %265 = vsyncpa [#allocation4], 1 }

// kernel: tpu_custom_call.1
= control target key start
LH: loop header
LB: loop body
LE: loop exit
PB: predicated region body
PF: predicated region fallthrough
CT: control target
= control target key end

     0   :  { %10 = vsyncpa [#allocation3], 0  ;;  %s484_s0 = inlined_call_operand.hbm [shape: f32[2,32], index: 0, kind: input, shape index: {}]   ;;  %s485_s1 = inlined_call_operand.hbm [shape: bf16[32,128], index: 1, kind: input, shape index: {}]   ;;  %s486_s2 = inlined_call_operand.vmem [shape: f32[1,128], index: 2, kind: input, shape index: {}]   ;;  %s487_s3 = inlined_call_operand.hbm [shape: bf16[128,128], index: 3, kind: input, shape index: {}]   ;;  %s488_s4 = inlined_call_operand.vmem [shape: f32[1,128], index: 4, kind: input, shape index: {}]   ;;  %s489_s5 = inlined_call_operand.hbm [shape: f32[2,128], index: 5, kind: output, shape index: {}]  }
   0x1   :  { %11 = vsyncpa [#allocation6], 0 }
   0x2   :  { %12 = vsyncpa [#allocation4], 0  ;;  %s428_s18 = smov [#allocation5]  }
   0x3   :  { %s28_s19 = sshll.u32 %s428_s18, 4  ;;  %s29_s19 = int_to_ptr.vmem [resolvable:$true] %s28_s19 }
   0x4   :  { %s350_s20 = scalar_lea.vmem %s29_s19, 256  ;;  %p355_p1 = scmp.lt.s32.totalorder %s29_s19, %s29_s19 }
   0x5   :  { %p351_p0 = scmp.ne.s32.totalorder %s29_s19, %s350_s20  ;;  %p356_p2 = scmp.lt.s32.totalorder %s350_s20, %s350_s20 }
   0x7   :  { %p357_p3 = por %p356_p2, %p355_p1 }
   0x9   :  { %p358_p4 = pnand %p357_p3, %p351_p0 }
   0xb   :  { %361 = shalt.err (!%p358_p4)
}
   0xc   :  { %s429_s21 = smov 64   ;;  %s430_s22 = smov 4  }
   0xd   :  { %34 = dma.hbm_to_vmem [thread:$0]  %s485_s1, 256, %s29_s19, [#allocation6], %s429_s21, %s429_s21, %s430_s22  }
   0xe   :  { %s431_s25 = smov [#allocation2]   ;;  %s432_s27 = smov [#allocation7]  }
   0xf   :  { %s19_s26 = sshll.u32 %s431_s25, 4  ;;  %s42_s28 = sshll.u32 %s432_s27, 4  ;;  %s20_s26 = int_to_ptr.vmem [resolvable:$true] %s19_s26  ;;  %s43_s28 = int_to_ptr.vmem [resolvable:$true] %s42_s28 }
  0x10   :  { %s370_s29 = scalar_lea.vmem %s20_s26, 32  ;;  %p375_p6 = scmp.lt.s32.totalorder %s20_s26, %s20_s26 }
  0x11   :  { %p371_p5 = scmp.ne.s32.totalorder %s20_s26, %s370_s29  ;;  %p376_p7 = scmp.lt.s32.totalorder %s370_s29, %s370_s29 }
  0x13   :  { %p377_p8 = por %p376_p7, %p375_p6 }
  0x15   :  { %p378_p9 = pnand %p377_p8, %p371_p5 }
  0x17   :  { %381 = shalt.err (!%p378_p9)
}
  0x18   :  { %22 = dma.hbm_to_vmem [thread:$0]  %s484_s0, 32, %s20_s26, [#allocation3]  }
  0x19   :  { %s390_s7 = scalar_lea.vmem %s43_s28, 1024  ;;  %p395_p11 = scmp.lt.s32.totalorder %s43_s28, %s43_s28 }
  0x1a   :  { %p391_p10 = scmp.ne.s32.totalorder %s43_s28, %s390_s7  ;;  %p396_p12 = scmp.lt.s32.totalorder %s390_s7, %s390_s7 }
  0x1c   :  { %p397_p13 = por %p396_p12, %p395_p11 }
  0x1e   :  { %p398_p0 = pnand %p397_p13, %p391_p10 }
  0x20   :  { %401 = shalt.err (!%p398_p0)
}
  0x21   :  { %48 = dma.hbm_to_vmem [thread:$0]  %s487_s3, 1024, %s43_s28, [#allocation6], %s429_s21, %s429_s21, %s430_s22  }
  0x22   :  { %422 = dma.done.wait [#allocation3], 32  }
  0x23   :  { %423 = vsyncadd [#allocation3], 4294967264 }
  0x24   :  { %424 = dma.done.wait [#allocation6], 1280  }
  0x25   :  { %425 = vsyncadd [#allocation6], 4294966016  ;;  %v433_v0 = vmov 0.0   ;;  %vm434_vm0 = vmmov 0   ;;  %v328_v1 = vld [vmem:[#allocation5 + $0x8] sm:$0xff]   ;;  %v329_v2 = vld [vmem:[#allocation5] sm:$0xff]  }
  0x26   :  { %292 = vmatprep.subr.bf16.mxu0 %v433_v0  ;;  %296 = vmatprep.mubr.msk.bf16.mxu0 %vm434_vm0, %v433_v0  ;;  %v61_v3 = vld [vmem:[#allocation2] sm:$0x3]  ;;  %vm86_vm1 = vcmask 261120   ;;  %v330_v5 = vld [vmem:[#allocation7 + $0x38] sm:$0xff]   ;;  %v331_v6 = vld [vmem:[#allocation7 + $0x30] sm:$0xff]   ;;  %s435_s11 = smov [#allocation8]  }
  0x27   :  { %300 = vmatprep.subr.bf16.mxu1 %v433_v0  ;;  %316 = vmatprep.mubr.msk.bf16.mxu1 %vm434_vm0, %v433_v0  ;;  %v62_v4 = vpack.c.bf16 %v61_v3, %v61_v3  ;;  %v332_v7 = vld [vmem:[#allocation7 + $0x28] sm:$0xff]   ;;  %v333_v8 = vld [vmem:[#allocation7 + $0x20] sm:$0xff]   ;;  %v334_v9 = vld [vmem:[#allocation7 + $0x18] sm:$0xff]  }
  0x28   :  { %293 = vmatpush3.bf16.msra.mxu0 %v328_v1  ;;  %301 = vmatpush3.bf16.msra.mxu1 %v330_v5  ;;  %v335_v10 = vld [vmem:[#allocation7 + $0x10] sm:$0xff]   ;;  %v336_v11 = vld [vmem:[#allocation7 + $0x8] sm:$0xff]   ;;  %v337_v12 = vld [vmem:[#allocation7] sm:$0xff]  }
  0x29   :  { %294 = vmatprep.subr.bf16.mxu0 %v433_v0  ;;  %302 = vmatprep.subr.bf16.mxu1 %v433_v0  ;;  %v266_v13 = vld [vmem:[%s486_s2] ss:$0 sm:$0xff]  ;;  %s256_s2 = sshll.u32 %s435_s11, 4  ;;  %s257_s2 = int_to_ptr.vmem [resolvable:$true] %s256_s2 }
  0x2a   :  { %v271_v25 = vld [vmem:[%s488_s4] ss:$0 sm:$0xff]  ;;  %s402_s12 = scalar_lea.vmem %s257_s2, 32  ;;  %p407_p2 = scmp.lt.s32.totalorder %s257_s2, %s257_s2 }
  0x2b   :  { %p403_p1 = scmp.ne.s32.totalorder %s257_s2, %s402_s12  ;;  %p408_p3 = scmp.lt.s32.totalorder %s402_s12, %s402_s12 }
  0x2c   :  { %295 = vmatpush3.bf16.msra.mxu0 %v329_v2  ;;  %303 = vmatpush3.bf16.msra.mxu1 %v331_v6 }
  0x2d   :  { %304 = vmatprep.subr.bf16.mxu1 %v433_v0  ;;  %p409_p4 = por %p408_p3, %p407_p2 }
  0x2f   :  { %297 = vmatmul.mubr.msk.bf16.vlgmr.msra.gmra.mxu0 %vm86_vm1, %v62_v4  ;;  %p410_p5 = pnand %p409_p4, %p403_p1 }
  0x30   :  { %305 = vmatpush3.bf16.msra.mxu1 %v332_v7 }
  0x31   :  { %306 = vmatprep.subr.bf16.mxu1 %v433_v0 }
  0x34   :  { %307 = vmatpush3.bf16.msra.mxu1 %v333_v8 }
  0x35   :  { %308 = vmatprep.subr.bf16.mxu1 %v433_v0 }
  0x38   :  { %309 = vmatpush3.bf16.msra.mxu1 %v334_v9 }
  0x39   :  { %310 = vmatprep.subr.bf16.mxu1 %v433_v0 }
  0x3c   :  { %311 = vmatpush3.bf16.msra.mxu1 %v335_v10 }
  0x3d   :  { %312 = vmatprep.subr.bf16.mxu1 %v433_v0 }
  0x40   :  { %313 = vmatpush3.bf16.msra.mxu1 %v336_v11 }
  0x41   :  { %314 = vmatprep.subr.bf16.mxu1 %v433_v0 }
  0x44   :  { %315 = vmatpush3.bf16.msra.mxu1 %v337_v12 }
  0xef   :  { %v124_v14 = vpop.f32.mrf.mxu0 }
  0xf0   :  { %v125_v15 = vadd.f32 %v266_v13, %v124_v14 }
  0xf1   :  { %v298_v16 = vpop.f32.mrf.mxu0 }
  0xf2   :  { %v270_v17 = vmul.f32 -1.442695, %v125_v15 }
  0xf3   :  { %v127_v18 = vpop.f32.mrf.mxu0 }
  0xf4   :  { %338 = vpow2.f32 %v270_v17 }
  0xf5   :  { %v299_v19 = vpop.f32.mrf.mxu0 }
 0x101   :  { %v339_v20 = vpop.eup %338 }
 0x102   :  { %v133_v21 = vadd.f32 1.0, %v339_v20 }
 0x104   :  { %340 = vrcp.f32 %v133_v21 }
 0x111   :  { %v341_v22 = vpop.eup %340 }
 0x112   :  { %v136_v23 = vmul.f32 %v341_v22, %v125_v15 }
 0x114   :  { %v137_v24 = vpack.c.bf16 %v136_v23, %v136_v23 }
 0x116   :  { %317 = vmatmul.mubr.bf16.vlgmr.msra.gmra.mxu1 %v137_v24 }
 0x1d6   :  { %v243_v26 = vpop.f32.mrf.mxu1 }
 0x1d7   :  { %v244_v27 = vadd.f32 %v271_v25, %v243_v26 }
 0x1d8   :  { %v318_v28 = vpop.f32.mrf.mxu1 }
 0x1d9   :  { %249 = vst [vmem:[#allocation8] sm:$0x3] %v244_v27 }
 0x1da   :  { %v246_v29 = vpop.f32.mrf.mxu1 }
 0x1db   :  { %413 = shalt.err (!%p410_p5)
}
 0x1dc   :  { %259 = dma.vmem_to_hbm [thread:$0]  %s257_s2, 32, %s489_s5, [#allocation4]   ;;  %v319_v30 = vpop.f32.mrf.mxu1 }
 0x1dd   :  { %426 = dma.done.wait [#allocation4], 32  }
 0x1de   :  { %427 = vsyncadd [#allocation4], 4294967264 }
 0x1df   :  { %263 = vsyncpa [#allocation3], 1 }
 0x1e0   :  { %264 = vsyncpa [#allocation6], 1 }
 0x1e1   :  { %265 = vsyncpa [#allocation4], 1 }

</bundles_post_ra>
